<compile_context>
chip_gen: v6e
topology: v6e:2x2x1
jax: 0.10.0
libtpu: 0.0.40
codegen_flags: <defaults>
</compile_context>

<pallas_src>
import math

import jax
import jax.numpy as jnp
from jax.experimental import pallas as pl
from jax.experimental.pallas import tpu as pltpu

_SQRT_HALF = 1.0 / math.sqrt(2.0)


def _round_up(x, m):
    return ((x + m - 1) // m) * m


def _cdiv(a, b):
    return (a + b - 1) // b


def _gelu_exact(x):
    # Matches torch.nn.GELU() default (erf-based, not tanh approximation).
    return 0.5 * x * (1.0 + jax.lax.erf(x * _SQRT_HALF))


# ---------------------------------------------------------------------------
# Kernels
# ---------------------------------------------------------------------------

def _ffn_resident_kernel(x_ref, w1_ref, b1_ref, w2_ref, b2_ref, o_ref):
    # 1-D grid over token tiles; full weights resident in VMEM (DMAed once).
    mid = jnp.dot(x_ref[...], w1_ref[...], preferred_element_type=jnp.float32)
    act = _gelu_exact(mid + b1_ref[...])            # f32 elementwise
    out = jnp.dot(act.astype(w2_ref.dtype), w2_ref[...],
                  preferred_element_type=jnp.float32) + b2_ref[...]
    o_ref[...] = out.astype(o_ref.dtype)


def _ffn_stream_f32out_kernel(x_ref, w1_ref, b1_ref, w2_ref, b2_ref, o_ref):
    # 2-D grid (token tiles, H tiles); f32 output tile is resident across k,
    # so accumulate directly into it (no scratch needed).
    k = pl.program_id(1)

    @pl.when(k == 0)
    def _init():
        o_ref[...] = jnp.broadcast_to(b2_ref[...], o_ref.shape)

    mid = jnp.dot(x_ref[...], w1_ref[...], preferred_element_type=jnp.float32)
    act = _gelu_exact(mid + b1_ref[...])
    o_ref[...] += jnp.dot(act.astype(w2_ref.dtype), w2_ref[...],
                          preferred_element_type=jnp.float32)


def _ffn_stream_scratch_kernel(x_ref, w1_ref, b1_ref, w2_ref, b2_ref, o_ref,
                               acc_ref):
    # 2-D grid; narrow output dtype -> accumulate in f32 scratch, cast at the end.
    k = pl.program_id(1)

    @pl.when(k == 0)
    def _init():
        acc_ref[...] = jnp.zeros_like(acc_ref)

    mid = jnp.dot(x_ref[...], w1_ref[...], preferred_element_type=jnp.float32)
    act = _gelu_exact(mid + b1_ref[...])
    acc_ref[...] += jnp.dot(act.astype(w2_ref.dtype), w2_ref[...],
                            preferred_element_type=jnp.float32)

    @pl.when(k == pl.num_programs(1) - 1)
    def _finalize():
        o_ref[...] = (acc_ref[...] + b2_ref[...]).astype(o_ref.dtype)


# ---------------------------------------------------------------------------
# Wrapper
# ---------------------------------------------------------------------------

def feed_forward_network(x, w1, b1, w2, b2, *, block_m=None, block_h=None,
                         param_dtype=jnp.bfloat16, out_dtype=None):
    """FFN forward (eval-mode dropout = identity).

    x:  (B, S, D)
    w1: (D, H)   b1: (H,)     -- torch Linear weight transposed to (in, out)
    w2: (H, O)   b2: (O,)
    param_dtype: dtype for x/w1/w2 on the MXU (default bf16, f32 accumulation).
    """
    B, S, D = x.shape
    H = w1.shape[1]
    O = w2.shape[1]
    assert w1.shape == (D, H) and b1.shape == (H,)
    assert w2.shape == (H, O) and b2.shape == (O,)
    M = B * S
    out_dtype = jnp.dtype(out_dtype or x.dtype)

    if param_dtype is not None:
        x = x.astype(param_dtype)
        w1 = w1.astype(param_dtype)
        w2 = w2.astype(param_dtype)
    b1 = b1.astype(jnp.float32)
    b2 = b2.astype(jnp.float32)

    in_bytes = jnp.dtype(x.dtype).itemsize
    out_bytes = out_dtype.itemsize

    # --- Lane-dense output: pad O up to a multiple of 128 ------------------
    O_pad = max(128, _round_up(O, 128))
    if O_pad != O:
        w2 = jnp.pad(w2, ((0, 0), (0, O_pad - O)))
        b2 = jnp.pad(b2, ((0, O_pad - O),))

    # --- Generation-aware VMEM budget ---------------------------------------
    try:
        vmem_cap = int(pltpu.get_tpu_info().vmem_capacity_bytes)
    except Exception:
        vmem_cap = 64 * 1024 * 1024
    headroom = min(vmem_cap // 4, 32 * 1024 * 1024)
    budget = max(32 * 1024 * 1024, vmem_cap - headroom)  # ~96 MiB v5e/v6e, ~48 MiB v7x

    # --- Token tile ----------------------------------------------------------
    # Sub-32-bit dtypes pack rows per sublane: 16-row alignment for bf16,
    # 32 for int8/fp8, 8 for f32.
    row_align = {1: 32, 2: 16}.get(in_bytes, 8)
    if block_m is None:
        block_m = 512 if in_bytes <= 2 else 256
    bm = min(_round_up(block_m, row_align), _round_up(M, row_align))
    # Keep >= 2 token tiles (v7x megacore sharding) whenever M allows it.
    if M > row_align and _cdiv(M, bm) < 2:
        bm = _round_up(_cdiv(M, 2), row_align)
    bm = max(row_align, bm)
    M_pad = _round_up(M, bm)
    m_tiles = M_pad // bm

    # --- Hidden-axis tile (budget-driven, includes D and O) -----------------
    def vmem_need(bh, scratch):
        need = 2 * (bm * D * in_bytes          # x tile (double buffered)
                    + D * bh * in_bytes        # w1 tile
                    + bh * 4                   # b1 tile (f32)
                    + bh * O_pad * in_bytes    # w2 tile
                    + O_pad * 4                # b2
                    + bm * O_pad * out_bytes)  # output tile
        if scratch:
            need += bm * O_pad * 4             # f32 accumulator
        return need + (2 << 20)                # headroom for internal scratch

    stream_needs_scratch = (out_dtype != jnp.float32)
    if block_h is None:
        if vmem_need(H, False) <= budget:
            block_h = H                        # fully resident, no k axis
        else:
            cands = sorted((c for c in range(128, H, 128) if H % c == 0),
                           reverse=True)
            block_h = None
            for c in cands:
                if vmem_need(c, stream_needs_scratch) <= budget:
                    block_h = c
                    break
            if block_h is None:
                block_h = cands[-1] if cands else H  # smallest legal tile
    assert H % block_h == 0 and (block_h == H or block_h % 128 == 0)
    resident = (block_h == H)
    k_tiles = H // block_h

    # --- Pack inputs ---------------------------------------------------------
    x2d = x.reshape(M, D)
    if M_pad != M:
        x2d = jnp.pad(x2d, ((0, M_pad - M), (0, 0)))
    b1_2d = b1.reshape(1, H)
    b2_2d = b2.reshape(1, O_pad)

    # --- Cost estimate (weights re-streamed once per token tile) ------------
    weight_reads = 1 if resident else m_tiles
    cost = pl.CostEstimate(
        flops=int(2 * M_pad * D * H + 2 * M_pad * H * O_pad),
        transcendentals=int(M_pad * H),
        bytes_accessed=int(x2d.size * in_bytes
                           + (w1.size + w2.size) * in_bytes * weight_reads
                           + (H + O_pad) * 4 * weight_reads
                           + M_pad * O_pad * out_bytes),
    )
    out_shape = jax.ShapeDtypeStruct((M_pad, O_pad), out_dtype)

    if resident:
        out2d = pl.pallas_call(
            _ffn_resident_kernel,
            out_shape=out_shape,
            grid_spec=pltpu.PrefetchScalarGridSpec(
                num_scalar_prefetch=0,
                grid=(m_tiles,),
                in_specs=[
                    pl.BlockSpec((bm, D), lambda i: (i, 0)),       # x tile
                    pl.BlockSpec((D, H), lambda i: (0, 0)),        # w1 (resident)
                    pl.BlockSpec((1, H), lambda i: (0, 0)),        # b1
                    pl.BlockSpec((H, O_pad), lambda i: (0, 0)),    # w2 (resident)
                    pl.BlockSpec((1, O_pad), lambda i: (0, 0)),    # b2
                ],
                out_specs=pl.BlockSpec((bm, O_pad), lambda i: (i, 0)),
            ),
            compiler_params=pltpu.CompilerParams(
                dimension_semantics=("parallel",),
                vmem_limit_bytes=int(budget),
            ),
            cost_estimate=cost,
        )(x2d, w1, b1_2d, w2, b2_2d)
    else:
        if out_dtype == jnp.float32:
            kernel = _ffn_stream_f32out_kernel
            scratch = []
        else:
            kernel = _ffn_stream_scratch_kernel
            scratch = [pltpu.VMEM((bm, O_pad), jnp.float32)]
        out2d = pl.pallas_call(
            kernel,
            out_shape=out_shape,
            grid_spec=pltpu.PrefetchScalarGridSpec(
                num_scalar_prefetch=0,
                grid=(m_tiles, k_tiles),
                in_specs=[
                    pl.BlockSpec((bm, D), lambda i, k: (i, 0)),            # x tile
                    pl.BlockSpec((D, block_h), lambda i, k: (0, k)),       # w1 tile
                    pl.BlockSpec((1, block_h), lambda i, k: (0, k)),       # b1 tile
                    pl.BlockSpec((block_h, O_pad), lambda i, k: (k, 0)),   # w2 tile
                    pl.BlockSpec((1, O_pad), lambda i, k: (0, 0)),         # b2
                ],
                out_specs=pl.BlockSpec((bm, O_pad), lambda i, k: (i, 0)),
                scratch_shapes=scratch,
            ),
            compiler_params=pltpu.CompilerParams(
                dimension_semantics=("parallel", "arbitrary"),
                vmem_limit_bytes=int(budget),
            ),
            cost_estimate=cost,
        )(x2d, w1, b1_2d, w2, b2_2d)

    out2d = out2d[:M, :O]
    return out2d.reshape(B, S, O)


def _reference(x, w1, b1, w2, b2):
    mid = jnp.einsum("bsd,dh->bsh", x, w1) + b1
    act = _gelu_exact(mid)
    return jnp.einsum("bsh,ho->bso", act, w2) + b2


if __name__ == "__main__":
    # Module hyperparameters (consistent with FeedForwardNetwork.__init__)
    input_dim = 32
    hidden_layer_factor = 4
    output_dim = 32
    hidden_dim = hidden_layer_factor * input_dim  # 128
    batch, seq = 2, 8

    key = jax.random.PRNGKey(0)
    kx, kw1, kb1, kw2, kb2 = jax.random.split(key, 5)

    x = jax.random.normal(kx, (batch, seq, input_dim), dtype=jnp.float32)

    # Deterministic parameter init (PyTorch-Linear-like uniform ranges).
    lim1 = 1.0 / math.sqrt(input_dim)
    w1 = jax.random.uniform(kw1, (input_dim, hidden_dim), jnp.float32, -lim1, lim1)
    b1 = jax.random.uniform(kb1, (hidden_dim,), jnp.float32, -lim1, lim1)
    lim2 = 1.0 / math.sqrt(hidden_dim)
    w2 = jax.random.uniform(kw2, (hidden_dim, output_dim), jnp.float32, -lim2, lim2)
    b2 = jax.random.uniform(kb2, (output_dim,), jnp.float32, -lim2, lim2)

    ref = _reference(x, w1, b1, w2, b2)

    # Default path: bf16 params (MXU-native), f32 accumulation, resident weights.
    out = jax.block_until_ready(feed_forward_network(x, w1, b1, w2, b2))
    assert out.shape == (batch, seq, output_dim)
    assert jnp.allclose(out, ref, atol=5e-2, rtol=5e-2), "bf16 default path mismatch"

    # Full-f32 path: tight tolerance against the reference.
    out_f32 = jax.block_until_ready(
        feed_forward_network(x, w1, b1, w2, b2, param_dtype=jnp.float32))
    assert out_f32.shape == (batch, seq, output_dim)
    assert jnp.allclose(out_f32, ref, atol=1e-5, rtol=1e-5), "f32 path mismatch"

    # Streamed-H paths (forced block_h < H) exercising the k-reduction kernels.
    hidden_dim2 = 512
    w1b = jax.random.uniform(kw1, (input_dim, hidden_dim2), jnp.float32, -lim1, lim1)
    b1b = jax.random.uniform(kb1, (hidden_dim2,), jnp.float32, -lim1, lim1)
    lim2b = 1.0 / math.sqrt(hidden_dim2)
    w2b = jax.random.uniform(kw2, (hidden_dim2, output_dim), jnp.float32, -lim2b, lim2b)
    b2b = jax.random.uniform(kb2, (output_dim,), jnp.float32, -lim2b, lim2b)
    refb = _reference(x, w1b, b1b, w2b, b2b)

    # f32 output -> direct accumulation into the resident output tile.
    outb = jax.block_until_ready(
        feed_forward_network(x, w1b, b1b, w2b, b2b, block_h=128))
    assert jnp.allclose(outb, refb, atol=5e-2, rtol=5e-2), "streamed f32-out mismatch"

    # bf16 output -> f32 scratch accumulator with pl.when finalize.
    outc = jax.block_until_ready(
        feed_forward_network(x, w1b, b1b, w2b, b2b, block_h=128,
                             out_dtype=jnp.bfloat16))
    assert jnp.allclose(outc.astype(jnp.float32), refb, atol=1e-1, rtol=1e-1), \
        "streamed bf16-out mismatch"

    print("KERNEL_OK")
</pallas_src>

<mosaic_0001>
module attributes {stable_mosaic.version = 11 : i64} {
  func.func @_ffn_resident_kernel(%arg0: i32, %arg1: memref<16x32xbf16, #tpu.memory_space<vmem>>, %arg2: memref<32x128xbf16, #tpu.memory_space<vmem>>, %arg3: memref<1x128xf32, #tpu.memory_space<vmem>>, %arg4: memref<128x128xbf16, #tpu.memory_space<vmem>>, %arg5: memref<1x128xf32, #tpu.memory_space<vmem>>, %arg6: memref<16x128xf32, #tpu.memory_space<vmem>>) attributes {dimension_semantics = [#tpu.dimension_semantics<parallel>], iteration_bounds = array<i64: 1>, scalar_prefetch = 0 : i64, scratch_operands = 0 : i64, tpu.core_type = #tpu.core_type<tc>, window_params = [{transform_indices = @transform_0, window_bounds = array<i64: 16, 32>}, {pipeline_mode = #tpu.pipeline_mode<synchronous>, transform_indices = @transform_1, window_bounds = array<i64: 32, 128>}, {pipeline_mode = #tpu.pipeline_mode<synchronous>, transform_indices = @transform_2, window_bounds = array<i64: 1, 128>}, {pipeline_mode = #tpu.pipeline_mode<synchronous>, transform_indices = @transform_3, window_bounds = array<i64: 128, 128>}, {pipeline_mode = #tpu.pipeline_mode<synchronous>, transform_indices = @transform_4, window_bounds = array<i64: 1, 128>}, {transform_indices = @transform_5, window_bounds = array<i64: 16, 128>}]} {
    %c0 = arith.constant 0 : index
    %c0_0 = arith.constant 0 : index
    %0 = vector.load %arg1[%c0, %c0_0] : memref<16x32xbf16, #tpu.memory_space<vmem>>, vector<16x32xbf16>
    %c0_1 = arith.constant 0 : index
    %c0_2 = arith.constant 0 : index
    %1 = vector.load %arg2[%c0_1, %c0_2] : memref<32x128xbf16, #tpu.memory_space<vmem>>, vector<32x128xbf16>
    %cst = arith.constant dense<0.000000e+00> : vector<16x128xf32>
    %2 = tpu.matmul %0, %1, %cst {dimension_numbers = #tpu.dot_dimension_numbers<[1], [0], [0], [1], [0, 0, 1, 1], [], []>} : vector<16x32xbf16>, vector<32x128xbf16>, vector<16x128xf32> -> vector<16x128xf32>
    %c0_3 = arith.constant 0 : index
    %c0_4 = arith.constant 0 : index
    %3 = vector.load %arg3[%c0_3, %c0_4] : memref<1x128xf32, #tpu.memory_space<vmem>>, vector<1x128xf32>
    %4 = vector.broadcast %3 : vector<1x128xf32> to vector<16x128xf32>
    %5 = arith.addf %2, %4 : vector<16x128xf32>
    %cst_5 = arith.constant 5.000000e-01 : f32
    %6 = vector.broadcast %cst_5 : f32 to vector<16x128xf32>
    %7 = arith.mulf %6, %5 : vector<16x128xf32>
    %cst_6 = arith.constant 0.707106769 : f32
    %8 = vector.broadcast %cst_6 : f32 to vector<16x128xf32>
    %9 = arith.mulf %5, %8 : vector<16x128xf32>
    %10 = math.erf %9 : vector<16x128xf32>
    %cst_7 = arith.constant 1.000000e+00 : f32
    %11 = vector.broadcast %cst_7 : f32 to vector<16x128xf32>
    %12 = arith.addf %11, %10 : vector<16x128xf32>
    %13 = arith.mulf %7, %12 : vector<16x128xf32>
    %14 = arith.truncf %13 : vector<16x128xf32> to vector<16x128xbf16>
    %c0_8 = arith.constant 0 : index
    %c0_9 = arith.constant 0 : index
    %15 = vector.load %arg4[%c0_8, %c0_9] : memref<128x128xbf16, #tpu.memory_space<vmem>>, vector<128x128xbf16>
    %cst_10 = arith.constant dense<0.000000e+00> : vector<16x128xf32>
    %16 = tpu.matmul %14, %15, %cst_10 {dimension_numbers = #tpu.dot_dimension_numbers<[1], [0], [0], [1], [0, 0, 1, 1], [], []>} : vector<16x128xbf16>, vector<128x128xbf16>, vector<16x128xf32> -> vector<16x128xf32>
    %c0_11 = arith.constant 0 : index
    %c0_12 = arith.constant 0 : index
    %17 = vector.load %arg5[%c0_11, %c0_12] : memref<1x128xf32, #tpu.memory_space<vmem>>, vector<1x128xf32>
    %18 = vector.broadcast %17 : vector<1x128xf32> to vector<16x128xf32>
    %19 = arith.addf %16, %18 : vector<16x128xf32>
    %c0_13 = arith.constant 0 : index
    %c0_14 = arith.constant 0 : index
    %20 = vector.load %arg6[%c0_13, %c0_14] : memref<16x128xf32, #tpu.memory_space<vmem>>, vector<16x128xf32>
    tpu.vector_store %arg6[%c0_13, %c0_14], %19 {strides = array<i32>} : memref<16x128xf32, #tpu.memory_space<vmem>>, vector<16x128xf32>,
    return
  }
  func.func @transform_0(%arg0: i32) -> (i32, i32) {
    %c0_i32 = arith.constant 0 : i32
    %c0_i32_0 = arith.constant 0 : i32
    return %arg0, %c0_i32 : i32, i32
  }
  func.func @transform_1(%arg0: i32) -> (i32, i32) {
    %c0_i32 = arith.constant 0 : i32
    %c0_i32_0 = arith.constant 0 : i32
    %c0_i32_1 = arith.constant 0 : i32
    return %c0_i32, %c0_i32_0 : i32, i32
  }
  func.func @transform_2(%arg0: i32) -> (i32, i32) {
    %c0_i32 = arith.constant 0 : i32
    %c0_i32_0 = arith.constant 0 : i32
    %c0_i32_1 = arith.constant 0 : i32
    return %c0_i32, %c0_i32_0 : i32, i32
  }
  func.func @transform_3(%arg0: i32) -> (i32, i32) {
    %c0_i32 = arith.constant 0 : i32
    %c0_i32_0 = arith.constant 0 : i32
    %c0_i32_1 = arith.constant 0 : i32
    return %c0_i32, %c0_i32_0 : i32, i32
  }
  func.func @transform_4(%arg0: i32) -> (i32, i32) {
    %c0_i32 = arith.constant 0 : i32
    %c0_i32_0 = arith.constant 0 : i32
    %c0_i32_1 = arith.constant 0 : i32
    return %c0_i32, %c0_i32_0 : i32, i32
  }
  func.func @transform_5(%arg0: i32) -> (i32, i32) {
    %c0_i32 = arith.constant 0 : i32
    %c0_i32_0 = arith.constant 0 : i32
    return %arg0, %c0_i32 : i32, i32
  }
}

</mosaic_0001>

<bundles_post_ra>
// kernel: tpu_custom_call.1
= control target key start
LH: loop header
LB: loop body
LE: loop exit
PB: predicated region body
PF: predicated region fallthrough
CT: control target
= control target key end

     0   :  { %10 = vsyncpa [#allocation3], 0  ;;  %s504_s0 = inlined_call_operand.hbm [shape: bf16[16,32], index: 0, kind: input, shape index: {}]   ;;  %s505_s1 = inlined_call_operand.hbm [shape: bf16[32,128], index: 1, kind: input, shape index: {}]   ;;  %s506_s2 = inlined_call_operand.vmem [shape: f32[1,128], index: 2, kind: input, shape index: {}]   ;;  %s507_s3 = inlined_call_operand.hbm [shape: bf16[128,128], index: 3, kind: input, shape index: {}]   ;;  %s508_s4 = inlined_call_operand.vmem [shape: f32[1,128], index: 4, kind: input, shape index: {}]   ;;  %s509_s5 = inlined_call_operand.hbm [shape: f32[16,128], index: 5, kind: output, shape index: {}]  }
   0x1   :  { %11 = vsyncpa [#allocation6], 0 }
   0x2   :  { %12 = vsyncpa [#allocation4], 0  ;;  %s446_s18 = smov [#allocation5]   ;;  %s447_s20 = smov [#allocation2]  }
   0x3   :  { %s30_s19 = sshll.u32 %s446_s18, 4  ;;  %s18_s21 = sshll.u32 %s447_s20, 4  ;;  %s31_s19 = int_to_ptr.vmem [resolvable:$true] %s30_s19  ;;  %s19_s21 = int_to_ptr.vmem [resolvable:$true] %s18_s21 }
   0x4   :  { %s368_s22 = scalar_lea.vmem %s31_s19, 256  ;;  %p373_p1 = scmp.lt.s32.totalorder %s31_s19, %s31_s19 }
   0x5   :  { %p369_p0 = scmp.ne.s32.totalorder %s31_s19, %s368_s22  ;;  %p374_p2 = scmp.lt.s32.totalorder %s368_s22, %s368_s22 }
   0x7   :  { %p375_p3 = por %p374_p2, %p373_p1 }
   0x9   :  { %p376_p4 = pnand %p375_p3, %p369_p0 }
   0xb   :  { %379 = shalt.err (!%p376_p4)
}
   0xc   :  { %s448_s23 = smov 64   ;;  %s449_s24 = smov 4  }
   0xd   :  { %36 = dma.hbm_to_vmem [thread:$0]  %s505_s1, 256, %s31_s19, [#allocation6], %s448_s23, %s448_s23, %s449_s24  }
   0xe   :  { %s388_s27 = scalar_lea.vmem %s19_s21, 128  ;;  %p393_p6 = scmp.lt.s32.totalorder %s19_s21, %s19_s21 }
   0xf   :  { %p389_p5 = scmp.ne.s32.totalorder %s19_s21, %s388_s27  ;;  %p394_p7 = scmp.lt.s32.totalorder %s388_s27, %s388_s27 }
  0x11   :  { %p395_p8 = por %p394_p7, %p393_p6 }
  0x13   :  { %p396_p9 = pnand %p395_p8, %p389_p5 }
  0x15   :  { %399 = shalt.err (!%p396_p9)
}
  0x16   :  { %24 = dma.hbm_to_vmem [thread:$0]  %s504_s0, 128, %s19_s21, [#allocation3], %s448_s23, %s448_s23, %s449_s24  }
  0x17   :  { %s450_s30 = smov [#allocation7]  }
  0x18   :  { %s44_s6 = sshll.u32 %s450_s30, 4  ;;  %s45_s6 = int_to_ptr.vmem [resolvable:$true] %s44_s6 }
  0x19   :  { %s408_s7 = scalar_lea.vmem %s45_s6, 1024  ;;  %p413_p11 = scmp.lt.s32.totalorder %s45_s6, %s45_s6 }
  0x1a   :  { %p409_p10 = scmp.ne.s32.totalorder %s45_s6, %s408_s7  ;;  %p414_p12 = scmp.lt.s32.totalorder %s408_s7, %s408_s7 }
  0x1c   :  { %p415_p13 = por %p414_p12, %p413_p11 }
  0x1e   :  { %p416_p0 = pnand %p415_p13, %p409_p10 }
  0x20   :  { %419 = shalt.err (!%p416_p0)
}
  0x21   :  { %50 = dma.hbm_to_vmem [thread:$0]  %s507_s3, 1024, %s45_s6, [#allocation6], %s448_s23, %s448_s23, %s449_s24  }
  0x22   :  { %440 = dma.done.wait [#allocation3], 128  }
  0x23   :  { %441 = vsyncadd [#allocation3], 4294967168 }
  0x24   :  { %442 = dma.done.wait [#allocation6], 1280  }
  0x25   :  { %443 = vsyncadd [#allocation6], 4294966016  ;;  %v451_v0 = vmov 0.0   ;;  %vm452_vm0 = vmmov 0   ;;  %v345_v1 = vld [vmem:[#allocation5 + $0x8] sm:$0xff]   ;;  %v346_v2 = vld [vmem:[#allocation5] sm:$0xff]  }
  0x26   :  { %307 = vmatprep.subr.bf16.mxu0 %v451_v0  ;;  %311 = vmatprep.mubr.msk.bf16.mxu0 %vm452_vm0, %v451_v0  ;;  %v348_v3 = vld [vmem:[#allocation7 + $0x38] sm:$0xff]   ;;  %v347_v4 = vld [vmem:[#allocation2] sm:$0xff]   ;;  %vm93_vm1 = vcmask 261120   ;;  %v349_v5 = vld [vmem:[#allocation7 + $0x30] sm:$0xff]   ;;  %s453_s10 = smov [#allocation8]  }
  0x27   :  { %315 = vmatprep.subr.bf16.mxu1 %v451_v0  ;;  %331 = vmatprep.mubr.msk.bf16.mxu1 %vm452_vm0, %v451_v0  ;;  %v350_v6 = vld [vmem:[#allocation7 + $0x28] sm:$0xff]   ;;  %v351_v7 = vld [vmem:[#allocation7 + $0x20] sm:$0xff]   ;;  %v352_v8 = vld [vmem:[#allocation7 + $0x18] sm:$0xff]   ;;  %s268_s11 = sshll.u32 %s453_s10, 4  ;;  %s269_s11 = int_to_ptr.vmem [resolvable:$true] %s268_s11 }
  0x28   :  { %308 = vmatpush3.bf16.msra.mxu0 %v345_v1  ;;  %316 = vmatpush3.bf16.msra.mxu1 %v348_v3  ;;  %v353_v9 = vld [vmem:[#allocation7 + $0x10] sm:$0xff]   ;;  %v354_v10 = vld [vmem:[#allocation7 + $0x8] sm:$0xff]   ;;  %v355_v11 = vld [vmem:[#allocation7] sm:$0xff]   ;;  %s420_s12 = scalar_lea.vmem %s269_s11, 256  ;;  %p425_p2 = scmp.lt.s32.totalorder %s269_s11, %s269_s11 }
  0x29   :  { %309 = vmatprep.subr.bf16.mxu0 %v451_v0  ;;  %317 = vmatprep.subr.bf16.mxu1 %v451_v0  ;;  %v281_v12 = vld [vmem:[%s506_s2] ss:$0 sm:$0xff]  ;;  %p421_p1 = scmp.ne.s32.totalorder %s269_s11, %s420_s12  ;;  %p426_p3 = scmp.lt.s32.totalorder %s420_s12, %s420_s12 }
  0x2a   :  { %v286_v30 = vld [vmem:[%s508_s4] ss:$0 sm:$0xff] }
  0x2b   :  { %p427_p4 = por %p426_p3, %p425_p2 }
  0x2c   :  { %310 = vmatpush3.bf16.msra.mxu0 %v346_v2  ;;  %318 = vmatpush3.bf16.msra.mxu1 %v349_v5 }
  0x2d   :  { %319 = vmatprep.subr.bf16.mxu1 %v451_v0  ;;  %p428_p5 = pnand %p427_p4, %p421_p1 }
  0x2f   :  { %312 = vmatmul.mubr.msk.bf16.vlgmr.msra.gmra.mxu0 %vm93_vm1, %v347_v4 }
  0x30   :  { %320 = vmatpush3.bf16.msra.mxu1 %v350_v6 }
  0x31   :  { %321 = vmatprep.subr.bf16.mxu1 %v451_v0 }
  0x34   :  { %322 = vmatpush3.bf16.msra.mxu1 %v351_v7 }
  0x35   :  { %323 = vmatprep.subr.bf16.mxu1 %v451_v0 }
  0x38   :  { %324 = vmatpush3.bf16.msra.mxu1 %v352_v8 }
  0x39   :  { %325 = vmatprep.subr.bf16.mxu1 %v451_v0 }
  0x3c   :  { %326 = vmatpush3.bf16.msra.mxu1 %v353_v9 }
  0x3d   :  { %327 = vmatprep.subr.bf16.mxu1 %v451_v0 }
  0x40   :  { %328 = vmatpush3.bf16.msra.mxu1 %v354_v10 }
  0x41   :  { %329 = vmatprep.subr.bf16.mxu1 %v451_v0 }
  0x44   :  { %330 = vmatpush3.bf16.msra.mxu1 %v355_v11 }
  0xef   :  { %v131_v13 = vpop.f32.mrf.mxu0 }
  0xf0   :  { %v132_v14 = vadd.f32 %v281_v12, %v131_v13 }
  0xf1   :  { %v313_v15 = vpop.f32.mrf.mxu0 }
  0xf2   :  { %v140_v16 = vmul.f32 0.70710677, %v132_v14  ;;  %v138_v24 = vmul.f32 0.5, %v132_v14 }
  0xf3   :  { %v134_v17 = vpop.f32.mrf.mxu0 }
  0xf4   :  { %356 = verf.f32 %v140_v16  ;;  %v135_v18 = vadd.f32 %v281_v12, %v134_v17 }
  0xf5   :  { %v314_v19 = vpop.f32.mrf.mxu0 }
  0xf6   :  { %v141_v20 = vmul.f32 0.70710677, %v135_v18  ;;  %v139_v25 = vmul.f32 0.5, %v135_v18 }
  0xf8   :  { %358 = verf.f32 %v141_v20 }
 0x101   :  { %v357_v21 = vpop.eup %356 }
 0x102   :  { %v144_v22 = vadd.f32 1.0, %v357_v21 }
 0x104   :  { %v146_v27 = vmul.f32 %v144_v22, %v138_v24 }
 0x105   :  { %v359_v23 = vpop.eup %358 }
 0x106   :  { %v145_v26 = vadd.f32 1.0, %v359_v23 }
 0x108   :  { %v147_v28 = vmul.f32 %v145_v26, %v139_v25 }
 0x10a   :  { %v148_v29 = vpack.c.bf16 %v147_v28, %v146_v27 }
 0x10c   :  { %332 = vmatmul.mubr.bf16.vlgmr.msra.gmra.mxu1 %v148_v29 }
 0x1cc   :  { %v254_v31 = vpop.f32.mrf.mxu1 }
 0x1cd   :  { %v255_v32 = vadd.f32 %v286_v30, %v254_v31 }
 0x1ce   :  { %v333_v33 = vpop.f32.mrf.mxu1 }
 0x1cf   :  { %261 = vst [vmem:[#allocation8] sm:$0xff] %v255_v32 }
 0x1d0   :  { %v257_v34 = vpop.f32.mrf.mxu1 }
 0x1d1   :  { %v258_v35 = vadd.f32 %v286_v30, %v257_v34 }
 0x1d2   :  { %v334_v36 = vpop.f32.mrf.mxu1 }
 0x1d3   :  { %262 = vst [vmem:[#allocation8 + $0x8] sm:$0xff] %v258_v35 }
 0x1d4   :  { %431 = shalt.err (!%p428_p5)
}
 0x1d5   :  { %s454_s13 = smov 128   ;;  %s455_s4 = smov 8  }
 0x1d6   :  { %274 = dma.vmem_to_hbm [thread:$0]  %s269_s11, 256, %s509_s5, [#allocation4], %s454_s13, %s454_s13, %s455_s4  }
 0x1d7   :  { %444 = dma.done.wait [#allocation4], 256  }
 0x1d8   :  { %445 = vsyncadd [#allocation4], 4294967040 }
 0x1d9   :  { %278 = vsyncpa [#allocation3], 1 }
 0x1da   :  { %279 = vsyncpa [#allocation6], 1 }
 0x1db   :  { %280 = vsyncpa [#allocation4], 1 }

</bundles_post_ra>
